<compile_context>
chip_gen: v5e
topology: v5e:2x2
jax: 0.10.0
libtpu: 0.0.40
codegen_flags: <defaults>
</compile_context>

<pallas_src>
import functools

import jax
import jax.numpy as jnp
from jax.experimental import pallas as pl
from jax.experimental.pallas import tpu as pltpu


_NUM_CORES = 2      # batch split across TensorCores ("parallel" axis);
                    # serializes harmlessly on single-TC chips (v5e/v6e).
_SUBLANES = 8
_LANES = 128


def _discriminator_kernel(pos_ref, neg_ref, w1_ref, b1_ref, w2r_ref, loss_ref,
                          *, tiles_per_core, true_batch, needs_mask):
    """Pairwise ranking loss for one batch tile of one core.

    pos_ref, neg_ref : [TB, F]   input tiles (any float dtype)
    w1_ref           : [F, F]    bfloat16 (Linear1 weight, in x out)
    b1_ref           : [1, F]    float32
    w2r_ref          : [1, F]    float32 (Linear2 weight as a row)
    loss_ref         : [8, 128]  float32, this core's accumulator tile
                       (uniformly filled with the core's running nll sum)
    """
    c = pl.program_id(0)      # core axis ("parallel")
    i = pl.program_id(1)      # batch-tile axis ("arbitrary")

    @pl.when(i == 0)
    def _init():
        loss_ref[...] = jnp.zeros_like(loss_ref)

    tb = pos_ref.shape[0]
    b1 = b1_ref[...]
    w1 = w1_ref[...]

    # Two MXU matmuls (bf16 operands, f32 accumulation); no in-VMEM concat.
    h_pos = jnp.dot(pos_ref[...].astype(jnp.bfloat16), w1,
                    preferred_element_type=jnp.float32) + b1
    h_neg = jnp.dot(neg_ref[...].astype(jnp.bfloat16), w1,
                    preferred_element_type=jnp.float32) + b1

    # z = (tanh(h_pos) - tanh(h_neg)) . w2   (Linear2 bias b2 cancels exactly).
    diff = jnp.tanh(h_pos) - jnp.tanh(h_neg)                    # [TB, F] f32
    z = jnp.sum(diff * w2r_ref[...], axis=-1, keepdims=True)    # [TB, 1]

    # -logsigmoid(z) = softplus(-z), numerically stable form.
    nll = jnp.maximum(-z, 0.0) + jnp.log1p(jnp.exp(-jnp.abs(z)))

    if needs_mask:
        # Zero out rows that came from batch padding.
        row0 = (c * tiles_per_core + i) * tb
        rows = row0 + jax.lax.broadcasted_iota(jnp.int32, (tb, 1), 0)
        nll = jnp.where(rows < true_batch, nll, 0.0)

    partial = jnp.sum(nll, keepdims=True)                       # (1, 1)
    # Full-tile (lane-dense, unmasked) accumulate into this core's output.
    loss_ref[...] += jnp.broadcast_to(partial, loss_ref.shape)


def _pick_batch_tile(batch, feat, in_itemsize, num_cores):
    """Largest multiple-of-8 batch tile that fits a ~32 MiB VMEM working set."""
    budget = 32 * 1024 * 1024
    # w1 (bf16, assume double-buffered) + b1/w2 rows + output tiles.
    fixed = 2 * feat * feat * 2 + 4 * feat * 4 + 2 * _SUBLANES * _LANES * 4
    # pos+neg double-buffered inputs + generous f32 intermediate estimate.
    per_row = feat * (4 * in_itemsize + 16)
    if budget > fixed + 8 * per_row:
        tb = (budget - fixed) // per_row
    else:
        # TODO(synk): for very large F, w1 alone outgrows a safe VMEM budget
        # (especially v7x's 64 MiB); add an output-dim tiling axis for Linear1
        # with partial-z accumulation instead of only shrinking the batch tile.
        tb = 8
    tb = int(max(8, min(tb, 2048)))
    # Don't tile larger than one (rounded-up) per-core share of the batch.
    per_core = -(-batch // num_cores)
    per_core = -(-per_core // 8) * 8
    tb = min(tb, max(per_core, 8))
    return max((tb // 8) * 8, 8)


def _vmem_limit_bytes(tb, feat, in_itemsize):
    est = (2 * feat * feat * 2            # w1 bf16, double-buffered
           + 4 * feat * 4                 # b1 + w2 rows, double-buffered
           + 2 * _SUBLANES * _LANES * 4   # output tiles
           + 2 * 2 * tb * feat * in_itemsize   # pos+neg, double-buffered
           + 16 * tb * feat)              # f32 intermediates
    return int(min(max(est * 5 // 4, 24 * 1024 * 1024), 48 * 1024 * 1024))


def discriminator_forward(pos_data, neg_data, w1, b1, w2, b2=None):
    """pos_data, neg_data: [B, F] (f32 or bf16); w1: [F, F] (in x out; note
    PyTorch nn.Linear stores [out, in] -> transpose when porting weights);
    b1: [1, F] or [F]; w2: [F, 1] / [1, F] / [F].  b2 is accepted for API
    parity but cancels in the pairwise loss.  Returns the scalar loss."""
    B, F = pos_data.shape
    assert neg_data.shape == (B, F)

    w1_bf16 = jnp.asarray(w1).astype(jnp.bfloat16)            # [F, F]
    b1_row = jnp.asarray(b1, jnp.float32).reshape(1, F)       # [1, F]
    w2_row = jnp.asarray(w2, jnp.float32).reshape(1, F)       # [1, F]

    in_itemsize = pos_data.dtype.itemsize
    tb = _pick_batch_tile(B, F, in_itemsize, _NUM_CORES)
    tiles_per_core = -(-B // (_NUM_CORES * tb))
    b_pad = _NUM_CORES * tiles_per_core * tb
    needs_mask = (b_pad != B)
    if needs_mask:
        pad = ((0, b_pad - B), (0, 0))
        pos_data = jnp.pad(pos_data, pad)
        neg_data = jnp.pad(neg_data, pad)

    kernel = functools.partial(
        _discriminator_kernel,
        tiles_per_core=tiles_per_core,
        true_batch=B,
        needs_mask=needs_mask,
    )

    grid_spec = pltpu.PrefetchScalarGridSpec(
        num_scalar_prefetch=0,
        grid=(_NUM_CORES, tiles_per_core),
        in_specs=[
            pl.BlockSpec((tb, F), lambda c, i: (c * tiles_per_core + i, 0)),  # pos
            pl.BlockSpec((tb, F), lambda c, i: (c * tiles_per_core + i, 0)),  # neg
            pl.BlockSpec((F, F), lambda c, i: (0, 0)),   # w1  (VMEM-resident)
            pl.BlockSpec((1, F), lambda c, i: (0, 0)),   # b1  (VMEM-resident)
            pl.BlockSpec((1, F), lambda c, i: (0, 0)),   # w2 row (VMEM-resident)
        ],
        out_specs=pl.BlockSpec((_SUBLANES, _LANES), lambda c, i: (c, 0)),
    )

    out = pl.pallas_call(
        kernel,
        out_shape=jax.ShapeDtypeStruct((_NUM_CORES * _SUBLANES, _LANES),
                                       jnp.float32),
        grid_spec=grid_spec,
        compiler_params=pltpu.CompilerParams(
            dimension_semantics=("parallel", "arbitrary"),
            vmem_limit_bytes=_vmem_limit_bytes(tb, F, in_itemsize)),
    )(pos_data, neg_data, w1_bf16, b1_row, w2_row)

    # Each core's (8,128) tile is uniformly filled with that core's nll sum.
    return jnp.sum(out[::_SUBLANES, 0]) * (1.0 / B)


def _reference_forward(pos_data, neg_data, w1, b1, w2, b2, *, bf16_matmul):
    """Pure-JAX reference mirroring the PyTorch module (b2 included; it
    cancels exactly). bf16_matmul mirrors the kernel's MXU operand cast."""
    cast = (lambda a: a.astype(jnp.bfloat16)) if bf16_matmul else (lambda a: a)

    def score(x):
        h = jnp.tanh(jnp.dot(cast(x), cast(w1),
                             preferred_element_type=jnp.float32) + b1)
        return jnp.dot(h, w2, preferred_element_type=jnp.float32) + b2

    z = score(pos_data) - score(neg_data)
    nll = jnp.maximum(-z, 0.0) + jnp.log1p(jnp.exp(-jnp.abs(z)))
    return jnp.mean(nll)


if __name__ == "__main__":
    # Small synthetic config: feature_size=32, batch=8
    F = 32
    B = 8

    key = jax.random.PRNGKey(0)
    k_pos, k_neg, k_w1, k_b1, k_w2, k_b2 = jax.random.split(key, 6)

    pos_data = jax.random.normal(k_pos, (B, F), dtype=jnp.float32)
    neg_data = jax.random.normal(k_neg, (B, F), dtype=jnp.float32)

    # Deterministic parameter init (PyTorch Linear-style uniform bounds).
    bound1 = 1.0 / (F ** 0.5)
    w1 = jax.random.uniform(k_w1, (F, F), jnp.float32, -bound1, bound1)  # in x out
    b1 = jax.random.uniform(k_b1, (1, F), jnp.float32, -bound1, bound1)
    w2 = jax.random.uniform(k_w2, (F, 1), jnp.float32, -bound1, bound1)  # in x out
    b2 = jax.random.uniform(k_b2, (1, 1), jnp.float32, -bound1, bound1)

    loss = discriminator_forward(pos_data, neg_data, w1, b1, w2, b2)
    loss = jax.block_until_ready(loss)

    # Tight check against a reference with identical (bf16-matmul) numerics.
    ref_mirror = _reference_forward(pos_data, neg_data, w1, b1, w2, b2,
                                    bf16_matmul=True)
    # Sanity check against the full-f32 PyTorch-equivalent math.
    ref_f32 = _reference_forward(pos_data, neg_data, w1, b1, w2, b2,
                                 bf16_matmul=False)

    assert jnp.allclose(loss, ref_mirror, atol=1e-4, rtol=1e-4), (loss, ref_mirror)
    assert jnp.allclose(loss, ref_f32, atol=5e-2, rtol=5e-2), (loss, ref_f32)

    print("KERNEL_OK")
</pallas_src>

<mosaic_0001>
module attributes {stable_mosaic.version = 11 : i64} {
  func.func @_discriminator_kernel(%arg0: i32, %arg1: i32, %arg2: memref<8x32xf32, #tpu.memory_space<vmem>>, %arg3: memref<8x32xf32, #tpu.memory_space<vmem>>, %arg4: memref<32x32xbf16, #tpu.memory_space<vmem>>, %arg5: memref<1x32xf32, #tpu.memory_space<vmem>>, %arg6: memref<1x32xf32, #tpu.memory_space<vmem>>, %arg7: memref<8x128xf32, #tpu.memory_space<vmem>>) attributes {dimension_semantics = [#tpu.dimension_semantics<parallel>, #tpu.dimension_semantics<arbitrary>], iteration_bounds = array<i64: 2, 1>, scalar_prefetch = 0 : i64, scratch_operands = 0 : i64, tpu.core_type = #tpu.core_type<tc>, window_params = [{transform_indices = @transform_0, window_bounds = array<i64: 8, 32>}, {transform_indices = @transform_1, window_bounds = array<i64: 8, 32>}, {pipeline_mode = #tpu.pipeline_mode<synchronous>, transform_indices = @transform_2, window_bounds = array<i64: 32, 32>}, {pipeline_mode = #tpu.pipeline_mode<synchronous>, transform_indices = @transform_3, window_bounds = array<i64: 1, 32>}, {pipeline_mode = #tpu.pipeline_mode<synchronous>, transform_indices = @transform_4, window_bounds = array<i64: 1, 32>}, {transform_indices = @transform_5, window_bounds = array<i64: 8, 128>}]} {
    %c0_i32 = arith.constant 0 : i32
    %0 = arith.cmpi eq, %arg1, %c0_i32 : i32
    %1 = arith.extui %0 : i1 to i32
    %c0_i32_0 = arith.constant 0 : i32
    %2 = arith.cmpi ne, %1, %c0_i32_0 : i32
    scf.if %2 {
      %cst_22 = arith.constant 0.000000e+00 : f32
      %53 = vector.broadcast %cst_22 : f32 to vector<8x128xf32>
      %c0_23 = arith.constant 0 : index
      %c0_24 = arith.constant 0 : index
      %54 = vector.load %arg7[%c0_23, %c0_24] : memref<8x128xf32, #tpu.memory_space<vmem>>, vector<8x128xf32>
      tpu.vector_store %arg7[%c0_23, %c0_24], %53 {strides = array<i32>} : memref<8x128xf32, #tpu.memory_space<vmem>>, vector<8x128xf32>,
    } else {
    }
    %c0 = arith.constant 0 : index
    %c0_1 = arith.constant 0 : index
    %3 = vector.load %arg5[%c0, %c0_1] : memref<1x32xf32, #tpu.memory_space<vmem>>, vector<1x32xf32>
    %c0_2 = arith.constant 0 : index
    %c0_3 = arith.constant 0 : index
    %4 = vector.load %arg4[%c0_2, %c0_3] : memref<32x32xbf16, #tpu.memory_space<vmem>>, vector<32x32xbf16>
    %c0_4 = arith.constant 0 : index
    %c0_5 = arith.constant 0 : index
    %5 = vector.load %arg2[%c0_4, %c0_5] : memref<8x32xf32, #tpu.memory_space<vmem>>, vector<8x32xf32>
    %6 = arith.truncf %5 : vector<8x32xf32> to vector<8x32xbf16>
    %cst = arith.constant dense<0.000000e+00> : vector<8x32xf32>
    %7 = tpu.matmul %6, %4, %cst {dimension_numbers = #tpu.dot_dimension_numbers<[1], [0], [0], [1], [0, 0, 1, 1], [], []>} : vector<8x32xbf16>, vector<32x32xbf16>, vector<8x32xf32> -> vector<8x32xf32>
    %8 = vector.broadcast %3 : vector<1x32xf32> to vector<8x32xf32>
    %9 = arith.addf %7, %8 : vector<8x32xf32>
    %c0_6 = arith.constant 0 : index
    %c0_7 = arith.constant 0 : index
    %10 = vector.load %arg3[%c0_6, %c0_7] : memref<8x32xf32, #tpu.memory_space<vmem>>, vector<8x32xf32>
    %11 = arith.truncf %10 : vector<8x32xf32> to vector<8x32xbf16>
    %cst_8 = arith.constant dense<0.000000e+00> : vector<8x32xf32>
    %12 = tpu.matmul %11, %4, %cst_8 {dimension_numbers = #tpu.dot_dimension_numbers<[1], [0], [0], [1], [0, 0, 1, 1], [], []>} : vector<8x32xbf16>, vector<32x32xbf16>, vector<8x32xf32> -> vector<8x32xf32>
    %13 = vector.broadcast %3 : vector<1x32xf32> to vector<8x32xf32>
    %14 = arith.addf %12, %13 : vector<8x32xf32>
    %15 = math.tanh %9 : vector<8x32xf32>
    %16 = math.tanh %14 : vector<8x32xf32>
    %17 = arith.subf %15, %16 : vector<8x32xf32>
    %c0_9 = arith.constant 0 : index
    %c0_10 = arith.constant 0 : index
    %18 = vector.load %arg6[%c0_9, %c0_10] : memref<1x32xf32, #tpu.memory_space<vmem>>, vector<1x32xf32>
    %19 = vector.broadcast %18 : vector<1x32xf32> to vector<8x32xf32>
    %20 = arith.mulf %17, %19 : vector<8x32xf32>
    %cst_11 = arith.constant dense<0.000000e+00> : vector<8xf32>
    %21 = vector.multi_reduction <add>, %20, %cst_11 [1] : vector<8x32xf32> to vector<8xf32>
    %22 = vector.shape_cast %21 : vector<8xf32> to vector<8x1xf32>
    %cst_12 = arith.constant 0.000000e+00 : f32
    %23 = vector.broadcast %cst_12 : f32 to vector<8x1xf32>
    %24 = arith.subf %23, %22 : vector<8x1xf32>
    %cst_13 = arith.constant 0.000000e+00 : f32
    %25 = vector.broadcast %cst_13 : f32 to vector<8x1xf32>
    %26 = arith.maximumf %24, %25 : vector<8x1xf32>
    %27 = math.absf %22 : vector<8x1xf32>
    %cst_14 = arith.constant 0.000000e+00 : f32
    %28 = vector.broadcast %cst_14 : f32 to vector<8x1xf32>
    %29 = arith.subf %28, %27 : vector<8x1xf32>
    %30 = math.exp %29 : vector<8x1xf32>
    %31 = math.log1p %30 : vector<8x1xf32>
    %32 = arith.addf %26, %31 : vector<8x1xf32>
    %c1_i32 = arith.constant 1 : i32
    %33 = arith.muli %arg0, %c1_i32 : i32
    %34 = arith.addi %33, %arg1 : i32
    %c8_i32 = arith.constant 8 : i32
    %35 = arith.muli %34, %c8_i32 : i32
    %36 = tpu.iota {dimensions = array<i32: 0>} : vector<8x1xi32>
    %37 = vector.broadcast %35 : i32 to vector<8x1xi32>
    %38 = arith.addi %37, %36 : vector<8x1xi32>
    %c8_i32_15 = arith.constant 8 : i32
    %39 = vector.broadcast %c8_i32_15 : i32 to vector<8x1xi32>
    %40 = arith.cmpi slt, %38, %39 : vector<8x1xi32>
    %cst_16 = arith.constant 0.000000e+00 : f32
    %41 = vector.broadcast %cst_16 : f32 to vector<8x1xf32>
    %42 = arith.select %40, %32, %41 : vector<8x1xi1>, vector<8x1xf32>
    %43 = vector.shape_cast %42 : vector<8x1xf32> to vector<1x8x1xf32>
    %cst_17 = arith.constant dense<0.000000e+00> : vector<1xf32>
    %44 = vector.multi_reduction <add>, %43, %cst_17 [1, 2] : vector<1x8x1xf32> to vector<1xf32>
    %45 = vector.shape_cast %44 : vector<1xf32> to vector<1x1x1xf32>
    %46 = vector.extract %45[0, 0, 0] : f32 from vector<1x1x1xf32>
    %47 = vector.broadcast %46 : f32 to vector<1x1xf32>
    %c0_18 = arith.constant 0 : index
    %c0_19 = arith.constant 0 : index
    %48 = vector.load %arg7[%c0_18, %c0_19] : memref<8x128xf32, #tpu.memory_space<vmem>>, vector<8x128xf32>
    %49 = vector.shape_cast %47 : vector<1x1xf32> to vector<1x1xf32>
    %50 = vector.broadcast %49 : vector<1x1xf32> to vector<8x128xf32>
    %51 = arith.addf %48, %50 : vector<8x128xf32>
    %c0_20 = arith.constant 0 : index
    %c0_21 = arith.constant 0 : index
    %52 = vector.load %arg7[%c0_20, %c0_21] : memref<8x128xf32, #tpu.memory_space<vmem>>, vector<8x128xf32>
    tpu.vector_store %arg7[%c0_20, %c0_21], %51 {strides = array<i32>} : memref<8x128xf32, #tpu.memory_space<vmem>>, vector<8x128xf32>,
    return
  }
  func.func @transform_0(%arg0: i32, %arg1: i32) -> (i32, i32) {
    %c1_i32 = arith.constant 1 : i32
    %0 = arith.muli %arg0, %c1_i32 : i32
    %1 = arith.addi %0, %arg1 : i32
    %c0_i32 = arith.constant 0 : i32
    %c0_i32_0 = arith.constant 0 : i32
    return %1, %c0_i32 : i32, i32
  }
  func.func @transform_1(%arg0: i32, %arg1: i32) -> (i32, i32) {
    %c1_i32 = arith.constant 1 : i32
    %0 = arith.muli %arg0, %c1_i32 : i32
    %1 = arith.addi %0, %arg1 : i32
    %c0_i32 = arith.constant 0 : i32
    %c0_i32_0 = arith.constant 0 : i32
    return %1, %c0_i32 : i32, i32
  }
  func.func @transform_2(%arg0: i32, %arg1: i32) -> (i32, i32) {
    %c0_i32 = arith.constant 0 : i32
    %c0_i32_0 = arith.constant 0 : i32
    %c0_i32_1 = arith.constant 0 : i32
    return %c0_i32, %c0_i32_0 : i32, i32
  }
  func.func @transform_3(%arg0: i32, %arg1: i32) -> (i32, i32) {
    %c0_i32 = arith.constant 0 : i32
    %c0_i32_0 = arith.constant 0 : i32
    %c0_i32_1 = arith.constant 0 : i32
    return %c0_i32, %c0_i32_0 : i32, i32
  }
  func.func @transform_4(%arg0: i32, %arg1: i32) -> (i32, i32) {
    %c0_i32 = arith.constant 0 : i32
    %c0_i32_0 = arith.constant 0 : i32
    %c0_i32_1 = arith.constant 0 : i32
    return %c0_i32, %c0_i32_0 : i32, i32
  }
  func.func @transform_5(%arg0: i32, %arg1: i32) -> (i32, i32) {
    %c0_i32 = arith.constant 0 : i32
    %c0_i32_0 = arith.constant 0 : i32
    return %arg0, %c0_i32 : i32, i32
  }
}

</mosaic_0001>

<bundles_post_ra>
// kernel: tpu_custom_call.1
= control target key start
LH: loop header
LB: loop body
LE: loop exit
PB: predicated region body
PF: predicated region fallthrough
CT: control target
= control target key end

     0   :  { %s1063_s0 = inlined_call_operand.hbm [shape: f32[16,32], index: 0, kind: input, shape index: {}]   ;;  %s1064_s1 = inlined_call_operand.hbm [shape: f32[16,32], index: 1, kind: input, shape index: {}]   ;;  %s1065_s2 = inlined_call_operand.hbm [shape: bf16[32,32], index: 2, kind: input, shape index: {}]   ;;  %s1066_s3 = inlined_call_operand.vmem [shape: f32[1,32], index: 3, kind: input, shape index: {}]   ;;  %s1067_s4 = inlined_call_operand.vmem [shape: f32[1,32], index: 4, kind: input, shape index: {}]   ;;  %s1068_s5 = inlined_call_operand.hbm [shape: f32[16,128], index: 5, kind: output, shape index: {}]  }
   0x1   :  { %1073 = sst [smem:[#allocation18_spill]] %s1065_s2 }
   0x2   :  { %10 = vsyncpa [#allocation3], 0 }
   0x3   :  { %12 = vsyncpa [#allocation3 + $0x1], 0 }
   0x4   :  { %13 = vsyncpa [#allocation6], 0 }
   0x5   :  { %15 = vsyncpa [#allocation6 + $0x1], 0 }
   0x6   :  { %16 = vsyncpa [#allocation4], 0 }
   0x7   :  { %18 = vsyncpa [#allocation4 + $0x1], 0  ;;  %s897_s18 = smov 0   ;;  %s899_s19 = smov 0  }
   0x8   :  { %s901_s20 = smov 0   ;;  %s903_s21 = smov 0  }
   0x9   :  { %s905_s22 = smov 0   ;;  %s907_s23 = smov 0  }
   0xa LB: > { %1074 = sst [smem:[#allocation13_spill]] %s850_s20  ;;  %s928_s24 = sadd.s32 4294967295, %s862_s23   ;;  %s862_s23 = sphi %s907_s23, %s24_s23   ;;  %s858_s22 = sphi %s905_s22, %s1089_s22   ;;  %s854_s21 = sphi %s903_s21, %s1088_s21   ;;  %s850_s20 = sphi %s901_s20, %s1087_s20   ;;  %s846_s19 = sphi %s899_s19, %s1091_s19   ;;  %s842_s18 = sphi %s897_s18, %s1090_s18  }
   0xb   : > { %1075 = sst [smem:[#allocation14_spill]] %s858_s22  ;;  %p560_p0 = scmp.ge.s32.totalorder %s862_s23, 1 }
   0xc   : > { %p59_p1 = scmp.eq.s32.totalorder %s928_s24, 0  ;;  %p186_p2 = scmp.lt.s32.totalorder %s862_s23, 3 }
   0xd   : > { %s1076_s2 = sld [smem:[#allocation18_spill]]  ;;  %s864_s29 = smov [#allocation7]  }
   0xe   : > { %p936_p3 = pnand %p560_p0, %p186_p2  ;;  %s199_s30 = sshll.u32 %s864_s29, 4  ;;  %s200_s30 = int_to_ptr.vmem [resolvable:$true] %s199_s30 }
   0xf   : > { %p562_p6 = scmp.ge.s32.totalorder %s862_s23, 2  ;;  %s865_s6 = smov 64  }
  0x10   : > { %p601_p4 = pneg %p936_p3  ;;  %s866_s7 = smov 4  }
  0x11   : > { %s559_s8 = sadd.s32 4294967294, %s862_s23   ;;  %s36_s9 = sadd.s32 1, %s858_s22 }
  0x12   : > { %p602_p5 = pnand %p601_p4, %p59_p1  ;;  %s45_s10 = sadd.s32 1, %s850_s20 }
  0x13   : > { %s197_s27 = sshll.u32 %s1076_s2, 4  ;;  %p38_p7 = scmp.ge.s32.totalorder %s36_s9, 2  ;;  %s198_s27 = int_to_ptr.hbm [resolvable:$true] %s197_s27 }
  0x14   : > { %604 = dma.hbm_to_vmem [thread:$0]  (!%p602_p5), %s198_s27, 256, %s200_s30, [#allocation6], %s865_s6, %s865_s6, %s866_s7  }
  0x15   : > { %p52_p8 = scmp.ne.s32.totalorder %s850_s20, %s846_s19  ;;  %p53_p9 = scmp.eq.s32.totalorder %s862_s23, 0 }
  0x16   : > { %p58_p10 = scmp.ne.s32.totalorder %s846_s19, %s842_s18  ;;  %s1093_s9 = smov (%p38_p7, %s36_s9), 0 }
  0x17   : > { %1078 = sst [smem:[#allocation15_spill]] %s1093_s9  ;;  %p955_p11 = por %p53_p9, %p52_p8 }
  0x18   : > { %p961_p12 = por %p59_p1, %p58_p10  ;;  %s42_s13 = ssub.s32 %s858_s22, %s1093_s9 }
  0x19   : > { %p173_p13 = scmp.eq.s32.totalorder %s928_s24, 1  ;;  %p43_p0 = scmp.eq.s32.totalorder %s42_s13, 0 }
  0x1a   : > { %p179_p2 = scmp.eq.s32.totalorder %s559_s8, 1  ;;  %p617_p5 = scmp.lt.s32.totalorder %s862_s23, 2 }
  0x1b   : > { %p968_p4 = por %p173_p13, %p52_p8  ;;  %s219_s17 = sand.u32 1, %s850_s20  }
  0x1c   : > { %s974_s15 = scalar_select %p43_p0, %s850_s20, %s45_s10  }
  0x1d   : > { %p976_p7 = por %p179_p2, %p58_p10  ;;  %s563_s25 = sshll.u32 %s219_s17, 3 }
  0x1e   : > { %1082 = sst [smem:[#allocation16_spill]] %s974_s15  ;;  %s564_s26 = sshll.u32 %s858_s22, 3 }
  0x1f   : > { %s1083_s16 = scalar_select %p976_p7, 1, 0 }
  0x20   : > { %s228_s30 = scalar_lea.hbm %s1063_s0, %s564_s26  ;;  %s223_s6 = scalar_lea.vmem [#allocation2], %s563_s25 }
  0x21   : > { %1084 = sst [smem:[#allocation17_spill]] %s1083_s16  ;;  %s232_s7 = sshll.u32 %s223_s6, 4  ;;  %s233_s7 = int_to_ptr.vmem [resolvable:$true] %s232_s7 }
  0x22   : > { %s230_s8 = sshll.u32 %s228_s30, 4  ;;  %p606_p8 = pnand %p617_p5, %p955_p11  ;;  %s231_s8 = int_to_ptr.hbm [resolvable:$true] %s230_s8 }
  0x23   : > { %s248_s2 = scalar_lea.hbm %s1064_s1, %s564_s26  ;;  %s239_s9 = sand.u32 1, %s862_s23  }
  0x24   : > { %s220_s15 = scalar_lea.sflag [#allocation3], %s219_s17  ;;  %s250_s20 = sshll.u32 %s248_s2, 4  ;;  %s251_s20 = int_to_ptr.hbm [resolvable:$true] %s250_s20 }
  0x25   : > { %608 = dma.hbm_to_vmem [thread:$0]  (!%p606_p8), %s231_s8, 128, %s233_s7, %s220_s15  }
  0x26   : > { %s243_s22 = scalar_lea.vmem [#allocation5], %s563_s25  ;;  %s240_s27 = scalar_lea.sflag [#allocation6], %s239_s9 }
  0x27   : > { %s252_s16 = sshll.u32 %s243_s22, 4  ;;  %261 = sbr.rel (%p936_p3) target bundleno = 526 (0x20e), region = 40  ;;  %s253_s16 = int_to_ptr.vmem [resolvable:$true] %s252_s16 }
  0x28   : > { %611 = dma.hbm_to_vmem [thread:$0]  (!%p606_p8), %s251_s20, 128, %s253_s16, %s240_s27  }
  0x29   : > { %s994_s11 = sand.u32 (!%p936_p3), 1, %s846_s19  }
  0x2a   : > { %s997_s26 = sshll.u32 (!%p936_p3), %s994_s11, 3  ;;  %s264_s15 = scalar_lea.sflag (!%p936_p3), [#allocation3], %s994_s11 }
  0x2b   : > { %s267_s2 = scalar_lea.vmem (!%p936_p3), [#allocation2], %s997_s26 }
  0x2c   : > { %825 = dma.done.wait (%p961_p12), %s264_s15, 128  }
  0x2d   : > { %827 = vsyncadd (%p961_p12), %s264_s15, 4294967168  ;;  %s273_s20 = sand.u32 1, %s928_s24   ;;  %s277_s28 = scalar_lea.vmem [#allocation5], %s997_s26 }
  0x2e   : > { %s274_s22 = scalar_lea.sflag [#allocation6], %s273_s20 }
  0x2f   : > { %829 = dma.done.wait (%p961_p12), %s274_s22, 128  }
  0x30   : > { %831 = vsyncadd (%p961_p12), %s274_s22, 4294967168 }
  0x31   : > { %833 = dma.done.wait (%p59_p1), [#allocation6], 256  }
  0x32   : > { %835 = vsyncadd (%p59_p1), [#allocation6], 4294967040  ;;  %v588_v0 = vld [vmem:[#allocation7 + $0x8] sm:$0xff]  ;;  %v587_v1 = vld [vmem:[#allocation7] sm:$0xff]  ;;  %vm345_vm0 = vcmask 261120   ;;  %v409_v24 = vlaneseq  ;;  %s582_s17 = sshll.u32 %s854_s21, 3 }
  0x33   : > { %355 = vmatpush.bf16.msra.mxu0 %v588_v0  ;;  %373 = vmatpush.bf16.msra.mxu1 %v588_v0  ;;  %v328_v2 = vld [vmem:[%s267_s2] sm:$0xff]  ;;  %v362_v3 = vld [vmem:[%s277_s28] sm:$0xff]  ;;  %v411_v28 = vstv %s582_s17  ;;  %vm415_vm3 = vcmask 7168   ;;  %s441_s29 = scalar_lea.hbm %s1068_s5, %s582_s17  ;;  %s314_s30 = scalar_lea.vmem [#allocation8], %s997_s26 }
  0x34   : > { %v329_v4 = vpack.c.bf16 %v328_v2, %v328_v2  ;;  %v363_v5 = vpack.c.bf16 %v362_v3, %v362_v3  ;;  %v672_v6 = vld [vmem:[%s1066_s3] ss:$0 sm:$0xff]  ;;  %v410_v27 = vshrl.u32 %v409_v24, 7  ;;  %s443_s6 = sshll.u32 %s314_s30, 4  ;;  %s445_s7 = sshll.u32 %s441_s29, 4  ;;  %s444_s6 = int_to_ptr.vmem [resolvable:$true] %s443_s6  ;;  %s446_s7 = int_to_ptr.hbm [resolvable:$true] %s445_s7 }
  0x35   : > { %v673_v14 = vld [vmem:[%s1067_s4] ss:$0 sm:$0xff]  ;;  %s431_s10 = scalar_lea.sflag [#allocation4], %s994_s11  ;;  %s786_s13 = sshra.s32 %s446_s7, 4  ;;  %s787_s13 = int_to_ptr.hbm [resolvable:$true] %s786_s13 }
  0x36   : > { %v412_v32 = vadd.s32 %v411_v28, %v410_v27  ;;  %s788_s27 = scalar_lea.hbm %s787_s13, 8  ;;  %s792_s20 = scalar_lea.hbm %s1068_s5, 16 }
  0x37   : > { %356 = vmatpush.bf16.msra.mxu0 %v587_v1  ;;  %374 = vmatpush.bf16.msra.mxu1 %v587_v1  ;;  %p789_p1 = scmp.ne.s32.totalorder %s787_s13, %s788_s27  ;;  %p793_p10 = scmp.lt.s32.totalorder %s787_s13, %s1068_s5 }
  0x38   : > { %vm413_vm2 = vcmp.lt.s32.totalorder %v412_v32, 8  ;;  %p794_p11 = scmp.lt.s32.totalorder %s792_s20, %s788_s27 }
  0x39   : > { %p790_p3 = pnand %p789_p1, %p968_p4 }
  0x3a   : > { %580 = vmatmul.msk.bf16.vlgmr.msra.gmra.mxu0 %vm345_vm0, %v329_v4  ;;  %581 = vmatmul.msk.bf16.vlgmr.msra.gmra.mxu1 %vm345_vm0, %v363_v5  ;;  %p795_p12 = por %p794_p11, %p793_p10 }
  0x3b   : > { %p791_p9 = pneg %p790_p3 }
  0x3d   : > { %p796_p13 = pnand %p795_p12, %p791_p9 }
  0xb7   : > { %v358_v7 = vpop.f32.mrf.mxu0  ;;  %v376_v8 = vpop.f32.mrf.mxu1 }
  0xb8   : > { %v359_v9 = vadd.f32 %v672_v6, %v358_v7  ;;  %v377_v10 = vadd.f32 %v672_v6, %v376_v8 }
  0xba   : > { %674 = vtanh.f32 %v359_v9 }
  0xbb   : > { %676 = vtanh.f32 %v377_v10 }
  0xbf   : > { %v360_v11 = vpop.f32.mrf.mxu0  ;;  %v378_v12 = vpop.f32.mrf.mxu1 }
  0xc0   : > { %v675_v13 = vpop.eup %674 }
  0xc1   : > { %v677_v15 = vpop.eup %676 }
  0xc2   : > { %v382_v16 = vsub.f32 %v675_v13, %v677_v15 }
  0xc4   : > { %v387_v17 = vmul.f32 %v673_v14, %v382_v16 }
  0xc6   : > { %v388_v18 = vsel %vm345_vm0, %v387_v17, 0.0 }
  0xc7   : > { %389 = vadd.xlane.f32.xlu0 %v388_v18 }
 0x13a   : > { %v390_v19 = vpop.xlane.xlu0 %389 }
 0x13b   : > { %v393_v20 = vand.u32 2147483647, %v390_v19  ;;  %v391_v30 = vsub.f32 0.0, %v390_v19 }
 0x13d   : > { %v394_v21 = vsub.f32 0.0, %v393_v20  ;;  %v392_v36 = vmax.f32 %v391_v30, 0.0 }
 0x13f   : > { %v395_v22 = vmul.f32 1.442695, %v394_v21 }
 0x141   : > { %678 = vpow2.f32 %v395_v22 }
 0x147   : > { %v679_v23 = vpop.eup %678 }
 0x148   : > { %v397_v25 = vadd.f32 1.0, %v679_v23  ;;  %v400_v26 = vmul.f32 -0.5, %v679_v23  ;;  %v403_v31 = vand.u32 2147483647, %v679_v23 }
 0x14a   : > { %680 = vlog2.f32 %v397_v25  ;;  %v401_v29 = vadd.f32 1.0, %v400_v26  ;;  %vm404_vm1 = vcmp.lt.f32.partialorder %v403_v31, 0.0004427343 }
 0x14c   : > { %v402_v35 = vmul.f32 %v679_v23, %v401_v29 }
 0x150   : > { %v681_v33 = vpop.eup %680 }
 0x151   : > { %v399_v34 = vmul.f32 0.6931472, %v681_v33 }
 0x153   : > { %v405_v37 = vsel %vm404_vm1, %v402_v35, %v399_v34 }
 0x154   : > { %v406_v38 = vadd.f32 %v405_v37, %v392_v36 }
 0x156   : > { %v414_v39 = vsel %vm413_vm2, %v406_v38, 0.0 }
 0x157   : > { %v416_v40 = vsel %vm415_vm3, %v414_v39, 0.0 }
 0x158   : > { %417 = vadd.xlane.f32.xlu0 %v416_v40 }
 0x1cb   : > { %v418_v41 = vpop.xlane.xlu0 %417 }
 0x1cc   : > { %v419_v42 = vrot.slane %v418_v41, 4 }
 0x1ce   : > { %v420_v43 = vadd.f32 %v419_v42, %v418_v41 }
 0x1d0   : > { %v421_v44 = vrot.slane %v420_v43, 2 }
 0x1d2   : > { %v422_v45 = vadd.f32 %v421_v44, %v420_v43 }
 0x1d4   : > { %v423_v46 = vrot.slane %v422_v45, 1 }
 0x1d6   : > { %v424_v47 = vadd.f32 %v423_v46, %v422_v45 }
 0x1d8   : > { %589 = vpush %v424_v47 }
 0x209   : > { %s590_s8 = spop %589 }
 0x20a   : > { %v427_v48 = vstv %s590_s8 }
 0x20b   : > { %429 = vst [vmem:[%s314_s30] sm:$0xff] %v427_v48 }
 0x20c   : > { %799 = shalt.err (!%p796_p13)
}
 0x20d   : > { %599 = dma.vmem_to_hbm [thread:$0]  (%p968_p4), %s444_s6, 128, %s446_s7, %s431_s10  }
 0x20e PF: > { %s457_s28 = sand.u32 1, %s842_s18   ;;  %p613_p0 = pnand %p562_p6, %p976_p7 }
 0x20f   : > { %s458_s9 = scalar_lea.sflag [#allocation4], %s457_s28 }
 0x210   : > { %p614_p2 = pneg %p613_p0 }
 0x212   : > { %837 = dma.done.wait (%p614_p2), %s458_s9, 128  }
 0x213   : > { %839 = vsyncadd (%p614_p2), %s458_s9, 4294967168  ;;  %s24_s23 = sadd.s32 1, %s862_s23   ;;  %s1086_s12 = sld [smem:[#allocation13_spill]] }
 0x214   : > { %p21_p5 = scmp.ge.s32.totalorder %s24_s23, 4   ;;  %s1087_s20 = sld [smem:[#allocation16_spill]] }
 0x215   : > { %s1088_s21 = sld [smem:[#allocation14_spill]]  ;;  %s1090_s18 = smov %s846_s19 }
 0x216   : > { %s1089_s22 = sld [smem:[#allocation15_spill]]  ;;  %23 = sbr.rel (!%p21_p5) target bundleno = 10 (0xa), region = 106 }
 0x219   : > { %s1091_s19 = smov %s1086_s12 }
 0x21b   :  { %464 = vsyncpa [#allocation3], 1 }
 0x21c   :  { %466 = vsyncpa [#allocation3 + $0x1], 1 }
 0x21d   :  { %467 = vsyncpa [#allocation6], 1 }
 0x21e   :  { %469 = vsyncpa [#allocation6 + $0x1], 1 }
 0x21f   :  { %470 = vsyncpa [#allocation4], 1 }
 0x220   :  { %472 = vsyncpa [#allocation4 + $0x1], 1 }

</bundles_post_ra>
